<compile_context>
chip_gen: v7x
topology: tpu7x:2x2x1
jax: 0.10.0
libtpu: 0.0.40
codegen_flags: <defaults>
</compile_context>

<pallas_src>
import math
import jax
import jax.numpy as jnp
from jax.experimental import pallas as pl
from jax.experimental.pallas import tpu as pltpu

# ---------------- config (small, consistent with the module) ----------------
B = 8
INPUT_DIM = 16
OUT_DIM = 16
HIDDEN_DIM = 32
LATENT_DIM = 24
TIME_EMBED_CHANNELS = 16
EMBED_CHANNELS = 32
LABEL_EMB_DIM = 8
BN_EPS = 1e-5
LANES = 128

# lane layout of the packed activation slab a0 (B, 128)
L_X = 0                                   # x          lanes  0:16
L_XS = INPUT_DIM                          # x_start    lanes 16:32
L_LABEL = 2 * INPUT_DIM                   # label      lane  32
L_TEMB = 40                               # time emb   lanes 40:56

# fused pass-A output lane layout
T1_OUT = 0                                # t1   (pre-SiLU) lanes 0:32
COND_OUT = 96                             # cond            lanes 96:120

# merged mlp1 input lane layout:
#   SiLU(t1) rows 0:32 | x rows 32:48 | cond rows 96:120 (rest zero)
A0_ROLL = 32                              # roll of a0 so x lands at 32:48
X_ROW = L_X + A0_ROLL                     # 32
COND_ROW = COND_OUT                       # 96
OUT_ROLL = (OUT_DIM - COND_OUT) % LANES   # 48: moves cond lanes 96:120 -> 16:40

# weight-slab indices in W (5, 128, 128)
W_A, W_B, W_MLP2, W_MLP3, W_MLP4 = range(5)
NUM_MATS = 5

# vector rows in V (8, 128) — exactly one vreg
(V_A, V_G1, V_BE1, V_G2, V_BE2, V_G3, V_BE3, V_B4) = range(8)
NUM_VECS = 8


# ---------------------------- Pallas kernel ---------------------------------
def noisepred_kernel(acts_ref, w_ref, vec_ref, out_ref):
    f32 = jnp.float32
    a0 = acts_ref[...]                                  # (B,128): x|xs|label|temb

    def vec(i):                                         # (1,128) bias/BN row
        return vec_ref[i:i + 1, :]

    def mm(lhs, i):                                     # one full-lane MXU pass
        return jnp.dot(lhs.astype(jnp.bfloat16), w_ref[i],
                       preferred_element_type=f32)

    # ---- pass A: fused encoder + time-embed Linear-1 (ONE matmul) ----------
    #   t1  on lanes 0:32   (temb rows of the slab)
    #   cond on lanes 96:120 (x_start rows + host-folded label row)
    r1 = mm(a0, W_A) + vec(V_A)

    # lane-gated SiLU: only the t1 lanes go through x*sigmoid(x); the cond
    # lanes (returned to the caller) pass through untouched.
    lane = jax.lax.broadcasted_iota(jnp.int32, r1.shape, 1)
    silu_r1 = r1 * jax.nn.sigmoid(r1)
    cat_base = jnp.where(lane < EMBED_CHANNELS, silu_r1, r1)

    # ---- mlp1 input assembled with one free XLU roll ------------------------
    # cat lanes: SiLU(t1) 0:32 | x 32:48 | cond 96:120; the rolled x_start /
    # label / temb lanes only hit all-zero weight rows of W_B.
    cat = cat_base + pltpu.roll(a0, A0_ROLL, axis=1)

    def bn_relu(h, g_i, b_i):
        # BatchNorm1d, training mode: batch mean, biased variance, eps=1e-5.
        # var = E[h^2] - mu^2 lets both XLU reductions issue off the matmul.
        # Padding lanes are all-zero -> stay exactly zero through BN+ReLU.
        mu = jnp.mean(h, axis=0, keepdims=True)
        msq = jnp.mean(h * h, axis=0, keepdims=True)
        var = msq - mu * mu
        hn = (h - mu) * jax.lax.rsqrt(var + BN_EPS)
        return jnp.maximum(hn * vec(g_i) + vec(b_i), 0.0)

    # ---- mlp1 (W_T2 folded in host-side; bias dropped — BN cancels it) ------
    h = bn_relu(mm(cat, W_B), V_G1, V_BE1)
    # ---- mlp2, mlp3 (biases dropped — BN cancels them) ----------------------
    h = bn_relu(mm(h, W_MLP2), V_G2, V_BE2)
    h = bn_relu(mm(h, W_MLP3), V_G3, V_BE3)
    # ---- mlp4 ----
    pred = mm(h, W_MLP4) + vec(V_B4)                    # nonzero lanes 0:16

    # ---- single lane-dense output slab: pred @ 0:16, cond @ 16:40 -----------
    # roll(r1, 48) places cond at 16:40; the t1 junk lands at 48:80, which the
    # wrapper never reads, so no mask is needed.
    out_ref[...] = pred + pltpu.roll(r1, OUT_ROLL, axis=1)


# ------------------------------- glue ----------------------------------------
def timestep_embedding(t, dim, max_period=10000.0):
    # utils.timestep_embedding (standard sinusoidal embedding, cos-first)
    half = dim // 2
    freqs = jnp.exp(-math.log(max_period) * jnp.arange(half, dtype=jnp.float32) / half)
    args = t.astype(jnp.float32)[:, None] * freqs[None, :]
    emb = jnp.concatenate([jnp.cos(args), jnp.sin(args)], axis=-1)
    if dim % 2:
        emb = jnp.concatenate([emb, jnp.zeros_like(emb[:, :1])], axis=-1)
    return emb


def init_params(key):
    def lin(k, fan_in, fan_out):
        kw, kb = jax.random.split(k)
        bound = 1.0 / math.sqrt(fan_in)
        w = jax.random.uniform(kw, (fan_in, fan_out), jnp.float32, -bound, bound)
        b = jax.random.uniform(kb, (1, fan_out), jnp.float32, -bound, bound)
        return w, b

    ks = jax.random.split(key, 10)
    p = {}
    # encoder
    p["w_label"] = jax.random.uniform(ks[0], (1, LABEL_EMB_DIM), jnp.float32, -1.0, 1.0)
    p["w_enc"], p["b_enc"] = lin(ks[1], INPUT_DIM + LABEL_EMB_DIM, LATENT_DIM)
    # time embed mlp
    p["w_t1"], p["b_t1"] = lin(ks[2], TIME_EMBED_CHANNELS, EMBED_CHANNELS)
    p["w_t2"], p["b_t2"] = lin(ks[3], EMBED_CHANNELS, EMBED_CHANNELS)
    # mlp1 (full concat weight, PyTorch order [x, time_emb, cond])
    p["w1"], p["b1"] = lin(ks[4], INPUT_DIM + EMBED_CHANNELS + LATENT_DIM, HIDDEN_DIM)
    p["g1"] = jnp.ones((1, HIDDEN_DIM), jnp.float32)
    p["be1"] = jnp.zeros((1, HIDDEN_DIM), jnp.float32)
    # mlp2
    p["w2"], p["b2"] = lin(ks[5], HIDDEN_DIM, LATENT_DIM)
    p["g2"] = jnp.ones((1, LATENT_DIM), jnp.float32)
    p["be2"] = jnp.zeros((1, LATENT_DIM), jnp.float32)
    # mlp3
    p["w3"], p["b3"] = lin(ks[6], LATENT_DIM, HIDDEN_DIM)
    p["g3"] = jnp.ones((1, HIDDEN_DIM), jnp.float32)
    p["be3"] = jnp.zeros((1, HIDDEN_DIM), jnp.float32)
    # mlp4
    p["w4"], p["b4"] = lin(ks[7], HIDDEN_DIM, OUT_DIM)
    return p


def pack_params(p):
    """One-time host-side repacking / algebraic folding into two buffers."""
    W = jnp.zeros((NUM_MATS, LANES, LANES), jnp.float32)

    # ---- pass-A slab: fused encoder + time-embed Linear-1 -------------------
    # cond output columns 96:120 fed by x_start rows 16:32 and the
    # pre-multiplied label row (label @ w_label @ w_enc_label) at row 32.
    w_enc_x = p["w_enc"][:INPUT_DIM]                                # (16,24)
    w_label_enc = p["w_label"] @ p["w_enc"][INPUT_DIM:]             # (1,24)
    W = W.at[W_A, L_XS:L_XS + INPUT_DIM, COND_OUT:COND_OUT + LATENT_DIM].set(w_enc_x)
    W = W.at[W_A, L_LABEL, COND_OUT:COND_OUT + LATENT_DIM].set(w_label_enc[0])
    # t1 output columns 0:32 fed by temb rows 40:56.
    W = W.at[W_A, L_TEMB:L_TEMB + TIME_EMBED_CHANNELS,
             T1_OUT:T1_OUT + EMBED_CHANNELS].set(p["w_t1"])

    # ---- pass-B slab: mlp1 with W_T2 folded in -------------------------------
    # rows 0:32  : W_T2 @ W1_t  (SiLU(t1) lanes)
    # rows 32:48 : W1_x         (rolled x lanes)
    # rows 96:120: W1_c         (cond lanes)
    # b1 / b_t2 contributions are constant rows -> cancelled by BN, dropped.
    w1_x = p["w1"][:INPUT_DIM]
    w1_t = p["w1"][INPUT_DIM:INPUT_DIM + EMBED_CHANNELS]
    w1_c = p["w1"][INPUT_DIM + EMBED_CHANNELS:]
    W = W.at[W_B, 0:EMBED_CHANNELS, :HIDDEN_DIM].set(p["w_t2"] @ w1_t)
    W = W.at[W_B, X_ROW:X_ROW + INPUT_DIM, :HIDDEN_DIM].set(w1_x)
    W = W.at[W_B, COND_ROW:COND_ROW + LATENT_DIM, :HIDDEN_DIM].set(w1_c)

    W = W.at[W_MLP2, :HIDDEN_DIM, :LATENT_DIM].set(p["w2"])   # b2 dropped (BN)
    W = W.at[W_MLP3, :LATENT_DIM, :HIDDEN_DIM].set(p["w3"])   # b3 dropped (BN)
    W = W.at[W_MLP4, :HIDDEN_DIM, :OUT_DIM].set(p["w4"])

    V = jnp.zeros((NUM_VECS, LANES), jnp.float32)
    V = V.at[V_A, T1_OUT:T1_OUT + EMBED_CHANNELS].set(p["b_t1"][0])
    V = V.at[V_A, COND_OUT:COND_OUT + LATENT_DIM].set(p["b_enc"][0])
    V = V.at[V_G1, :HIDDEN_DIM].set(p["g1"][0])
    V = V.at[V_BE1, :HIDDEN_DIM].set(p["be1"][0])
    V = V.at[V_G2, :LATENT_DIM].set(p["g2"][0])
    V = V.at[V_BE2, :LATENT_DIM].set(p["be2"][0])
    V = V.at[V_G3, :HIDDEN_DIM].set(p["g3"][0])
    V = V.at[V_BE3, :HIDDEN_DIM].set(p["be3"][0])
    V = V.at[V_B4, :OUT_DIM].set(p["b4"][0])

    # bf16 weight slab: halves the dominant HBM transfer, native MXU dtype.
    return {"W": W.astype(jnp.bfloat16), "V": V}


@jax.jit
def noisepred_forward(packed, x, t, x_start, label):
    # Pack all per-call activations (incl. the sinusoidal time embedding) into
    # a single lane-dense (B, 128) f32 slab -> one operand DMA into the kernel.
    temb = timestep_embedding(t, TIME_EMBED_CHANNELS)
    bsz = x.shape[0]
    acts = jnp.concatenate(
        [x.astype(jnp.float32),                                   # lanes  0:16
         x_start.astype(jnp.float32),                             # lanes 16:32
         label.astype(jnp.float32),                               # lane  32
         jnp.zeros((bsz, L_TEMB - (L_LABEL + 1)), jnp.float32),   # lanes 33:40
         temb,                                                    # lanes 40:56
         jnp.zeros((bsz, LANES - (L_TEMB + TIME_EMBED_CHANNELS)), jnp.float32)],
        axis=1)

    vmem = pl.BlockSpec(memory_space=pltpu.MemorySpace.VMEM)
    out = pl.pallas_call(
        noisepred_kernel,
        out_shape=jax.ShapeDtypeStruct((bsz, LANES), jnp.float32),
        in_specs=[vmem, vmem, vmem],
        out_specs=vmem,
        compiler_params=pltpu.CompilerParams(vmem_limit_bytes=8 * 1024 * 1024),
        cost_estimate=pl.CostEstimate(
            flops=NUM_MATS * 2 * bsz * LANES * LANES,             # 5 MXU passes
            transcendentals=bsz * LANES + 3 * LANES,              # sigmoid + rsqrt
            bytes_accessed=(bsz * LANES * 4                       # acts in
                            + NUM_MATS * LANES * LANES * 2        # bf16 weights
                            + NUM_VECS * LANES * 4                # bias/BN rows
                            + bsz * LANES * 4)),                  # out slab
    )(acts, packed["W"], packed["V"])

    # unpack the lane-dense output slab (lanes 40+ are never read)
    return {"pred": out[:, :OUT_DIM],
            "cond": out[:, OUT_DIM:OUT_DIM + LATENT_DIM]}
    # TODO(synk): for repeated calls with fixed weights (diffusion sampling),
    # wrap this in a grid=(Q,) pallas_call with a constant weight index_map so
    # the W/V slabs stay resident and the dispatch cost is amortized; on v7x
    # also mark that axis "parallel" to use both TensorCores.


def noisepred_forward_ref(p, x, t, x_start, label):
    # pure-JAX reference mirroring the PyTorch module exactly (train-mode BN).
    temb = timestep_embedding(t, TIME_EMBED_CHANNELS)
    label_emb = label @ p["w_label"]
    cond = jnp.concatenate([x_start, label_emb], axis=1) @ p["w_enc"] + p["b_enc"]
    t1 = temb @ p["w_t1"] + p["b_t1"]
    t1 = t1 * jax.nn.sigmoid(t1)
    time_emb = t1 @ p["w_t2"] + p["b_t2"]

    def bn_relu(h, g, b):
        mu = h.mean(axis=0, keepdims=True)
        var = ((h - mu) ** 2).mean(axis=0, keepdims=True)
        return jnp.maximum((h - mu) / jnp.sqrt(var + BN_EPS) * g + b, 0.0)

    h = jnp.concatenate([x, time_emb, cond], axis=1) @ p["w1"] + p["b1"]
    h = bn_relu(h, p["g1"], p["be1"])
    h = bn_relu(h @ p["w2"] + p["b2"], p["g2"], p["be2"])
    h = bn_relu(h @ p["w3"] + p["b3"], p["g3"], p["be3"])
    pred = h @ p["w4"] + p["b4"]
    return {"pred": pred, "cond": cond}


if __name__ == "__main__":
    key = jax.random.PRNGKey(0)
    kp, kx, kxs, kl, kt = jax.random.split(key, 5)
    params = init_params(kp)
    packed = pack_params(params)

    x = jax.random.normal(kx, (B, INPUT_DIM), jnp.float32)
    x_start = jax.random.normal(kxs, (B, INPUT_DIM), jnp.float32)
    label = jax.random.randint(kl, (B, 1), 0, 2).astype(jnp.float32)
    t = jax.random.randint(kt, (B,), 0, 1000).astype(jnp.float32)

    out = noisepred_forward(packed, x, t, x_start, label)
    jax.block_until_ready(out)

    ref = noisepred_forward_ref(params, x, t, x_start, label)
    # Tolerance reflects bf16 weight storage + bf16 MXU passes vs f32 reference.
    assert jnp.allclose(out["pred"], ref["pred"], atol=3e-2, rtol=3e-2)
    assert jnp.allclose(out["cond"], ref["cond"], atol=3e-2, rtol=3e-2)

    print("KERNEL_OK")
</pallas_src>

<mosaic_0001>
module attributes {stable_mosaic.version = 11 : i64} {
  func.func @noisepred_kernel(%arg0: memref<8x128xf32, #tpu.memory_space<vmem>>, %arg1: memref<5x128x128xbf16, #tpu.memory_space<vmem>>, %arg2: memref<8x128xf32, #tpu.memory_space<vmem>>, %arg3: memref<8x128xf32, #tpu.memory_space<vmem>>) attributes {dimension_semantics = [], scalar_prefetch = 0 : i64, scratch_operands = 0 : i64, tpu.core_type = #tpu.core_type<tc>} {
    %c0 = arith.constant 0 : index
    %c0_0 = arith.constant 0 : index
    %0 = vector.load %arg0[%c0, %c0_0] : memref<8x128xf32, #tpu.memory_space<vmem>>, vector<8x128xf32>
    %1 = arith.truncf %0 : vector<8x128xf32> to vector<8x128xbf16>
    %c0_1 = arith.constant 0 : index
    %c0_2 = arith.constant 0 : index
    %c0_3 = arith.constant 0 : index
    %2 = vector.load %arg1[%c0_1, %c0_2, %c0_3] : memref<5x128x128xbf16, #tpu.memory_space<vmem>>, vector<1x128x128xbf16>
    %3 = vector.shape_cast %2 : vector<1x128x128xbf16> to vector<128x128xbf16>
    %cst = arith.constant dense<0.000000e+00> : vector<8x128xf32>
    %4 = tpu.matmul %1, %3, %cst {dimension_numbers = #tpu.dot_dimension_numbers<[1], [0], [0], [1], [0, 0, 1, 1], [], []>} : vector<8x128xbf16>, vector<128x128xbf16>, vector<8x128xf32> -> vector<8x128xf32>
    %c0_4 = arith.constant 0 : index
    %c0_5 = arith.constant 0 : index
    %5 = vector.load %arg2[%c0_4, %c0_5] : memref<8x128xf32, #tpu.memory_space<vmem>>, vector<1x128xf32>
    %6 = vector.broadcast %5 : vector<1x128xf32> to vector<8x128xf32>
    %7 = arith.addf %4, %6 : vector<8x128xf32>
    %8 = tpu.iota {dimensions = array<i32: 1>} : vector<8x128xi32>
    %9 = arith.negf %7 : vector<8x128xf32>
    %10 = math.exp %9 : vector<8x128xf32>
    %cst_6 = arith.constant 1.000000e+00 : f32
    %11 = vector.broadcast %cst_6 : f32 to vector<8x128xf32>
    %12 = arith.addf %11, %10 : vector<8x128xf32>
    %13 = arith.divf %11, %12 : vector<8x128xf32>
    %14 = arith.mulf %7, %13 : vector<8x128xf32>
    %c32_i32 = arith.constant 32 : i32
    %15 = vector.broadcast %c32_i32 : i32 to vector<8x128xi32>
    %16 = arith.cmpi slt, %8, %15 : vector<8x128xi32>
    %17 = arith.select %16, %14, %7 : vector<8x128xi1>, vector<8x128xf32>
    %c32_i32_7 = arith.constant 32 : i32
    %18 = tpu.dynamic_rotate %0 by %c32_i32_7 dim 1 : vector<8x128xf32>, i32 -> vector<8x128xf32>
    %19 = arith.addf %17, %18 : vector<8x128xf32>
    %20 = arith.truncf %19 : vector<8x128xf32> to vector<8x128xbf16>
    %c1 = arith.constant 1 : index
    %c0_8 = arith.constant 0 : index
    %c0_9 = arith.constant 0 : index
    %21 = vector.load %arg1[%c1, %c0_8, %c0_9] : memref<5x128x128xbf16, #tpu.memory_space<vmem>>, vector<1x128x128xbf16>
    %22 = vector.shape_cast %21 : vector<1x128x128xbf16> to vector<128x128xbf16>
    %cst_10 = arith.constant dense<0.000000e+00> : vector<8x128xf32>
    %23 = tpu.matmul %20, %22, %cst_10 {dimension_numbers = #tpu.dot_dimension_numbers<[1], [0], [0], [1], [0, 0, 1, 1], [], []>} : vector<8x128xbf16>, vector<128x128xbf16>, vector<8x128xf32> -> vector<8x128xf32>
    %cst_11 = arith.constant dense<0.000000e+00> : vector<128xf32>
    %24 = vector.multi_reduction <add>, %23, %cst_11 [0] : vector<8x128xf32> to vector<128xf32>
    %25 = vector.shape_cast %24 : vector<128xf32> to vector<1x128xf32>
    %cst_12 = arith.constant 8.000000e+00 : f32
    %26 = vector.broadcast %cst_12 : f32 to vector<1x128xf32>
    %27 = arith.divf %25, %26 : vector<1x128xf32>
    %28 = arith.mulf %23, %23 : vector<8x128xf32>
    %cst_13 = arith.constant dense<0.000000e+00> : vector<128xf32>
    %29 = vector.multi_reduction <add>, %28, %cst_13 [0] : vector<8x128xf32> to vector<128xf32>
    %30 = vector.shape_cast %29 : vector<128xf32> to vector<1x128xf32>
    %cst_14 = arith.constant 8.000000e+00 : f32
    %31 = vector.broadcast %cst_14 : f32 to vector<1x128xf32>
    %32 = arith.divf %30, %31 : vector<1x128xf32>
    %33 = arith.mulf %27, %27 : vector<1x128xf32>
    %34 = arith.subf %32, %33 : vector<1x128xf32>
    %35 = vector.broadcast %27 : vector<1x128xf32> to vector<8x128xf32>
    %36 = arith.subf %23, %35 : vector<8x128xf32>
    %cst_15 = arith.constant 9.99999974E-6 : f32
    %37 = vector.broadcast %cst_15 : f32 to vector<1x128xf32>
    %38 = arith.addf %34, %37 : vector<1x128xf32>
    %39 = math.rsqrt %38 : vector<1x128xf32>
    %40 = vector.broadcast %39 : vector<1x128xf32> to vector<8x128xf32>
    %41 = arith.mulf %36, %40 : vector<8x128xf32>
    %c1_16 = arith.constant 1 : index
    %c0_17 = arith.constant 0 : index
    %42 = vector.load %arg2[%c1_16, %c0_17] : memref<8x128xf32, #tpu.memory_space<vmem>>, vector<1x128xf32>
    %43 = vector.broadcast %42 : vector<1x128xf32> to vector<8x128xf32>
    %44 = arith.mulf %41, %43 : vector<8x128xf32>
    %c2 = arith.constant 2 : index
    %c0_18 = arith.constant 0 : index
    %45 = vector.load %arg2[%c2, %c0_18] : memref<8x128xf32, #tpu.memory_space<vmem>>, vector<1x128xf32>
    %46 = vector.broadcast %45 : vector<1x128xf32> to vector<8x128xf32>
    %47 = arith.addf %44, %46 : vector<8x128xf32>
    %cst_19 = arith.constant 0.000000e+00 : f32
    %48 = vector.broadcast %cst_19 : f32 to vector<8x128xf32>
    %49 = arith.maximumf %47, %48 : vector<8x128xf32>
    %50 = arith.truncf %49 : vector<8x128xf32> to vector<8x128xbf16>
    %c2_20 = arith.constant 2 : index
    %c0_21 = arith.constant 0 : index
    %c0_22 = arith.constant 0 : index
    %51 = vector.load %arg1[%c2_20, %c0_21, %c0_22] : memref<5x128x128xbf16, #tpu.memory_space<vmem>>, vector<1x128x128xbf16>
    %52 = vector.shape_cast %51 : vector<1x128x128xbf16> to vector<128x128xbf16>
    %cst_23 = arith.constant dense<0.000000e+00> : vector<8x128xf32>
    %53 = tpu.matmul %50, %52, %cst_23 {dimension_numbers = #tpu.dot_dimension_numbers<[1], [0], [0], [1], [0, 0, 1, 1], [], []>} : vector<8x128xbf16>, vector<128x128xbf16>, vector<8x128xf32> -> vector<8x128xf32>
    %cst_24 = arith.constant dense<0.000000e+00> : vector<128xf32>
    %54 = vector.multi_reduction <add>, %53, %cst_24 [0] : vector<8x128xf32> to vector<128xf32>
    %55 = vector.shape_cast %54 : vector<128xf32> to vector<1x128xf32>
    %cst_25 = arith.constant 8.000000e+00 : f32
    %56 = vector.broadcast %cst_25 : f32 to vector<1x128xf32>
    %57 = arith.divf %55, %56 : vector<1x128xf32>
    %58 = arith.mulf %53, %53 : vector<8x128xf32>
    %cst_26 = arith.constant dense<0.000000e+00> : vector<128xf32>
    %59 = vector.multi_reduction <add>, %58, %cst_26 [0] : vector<8x128xf32> to vector<128xf32>
    %60 = vector.shape_cast %59 : vector<128xf32> to vector<1x128xf32>
    %cst_27 = arith.constant 8.000000e+00 : f32
    %61 = vector.broadcast %cst_27 : f32 to vector<1x128xf32>
    %62 = arith.divf %60, %61 : vector<1x128xf32>
    %63 = arith.mulf %57, %57 : vector<1x128xf32>
    %64 = arith.subf %62, %63 : vector<1x128xf32>
    %65 = vector.broadcast %57 : vector<1x128xf32> to vector<8x128xf32>
    %66 = arith.subf %53, %65 : vector<8x128xf32>
    %cst_28 = arith.constant 9.99999974E-6 : f32
    %67 = vector.broadcast %cst_28 : f32 to vector<1x128xf32>
    %68 = arith.addf %64, %67 : vector<1x128xf32>
    %69 = math.rsqrt %68 : vector<1x128xf32>
    %70 = vector.broadcast %69 : vector<1x128xf32> to vector<8x128xf32>
    %71 = arith.mulf %66, %70 : vector<8x128xf32>
    %c3 = arith.constant 3 : index
    %c0_29 = arith.constant 0 : index
    %72 = vector.load %arg2[%c3, %c0_29] : memref<8x128xf32, #tpu.memory_space<vmem>>, vector<1x128xf32>
    %73 = vector.broadcast %72 : vector<1x128xf32> to vector<8x128xf32>
    %74 = arith.mulf %71, %73 : vector<8x128xf32>
    %c4 = arith.constant 4 : index
    %c0_30 = arith.constant 0 : index
    %75 = vector.load %arg2[%c4, %c0_30] : memref<8x128xf32, #tpu.memory_space<vmem>>, vector<1x128xf32>
    %76 = vector.broadcast %75 : vector<1x128xf32> to vector<8x128xf32>
    %77 = arith.addf %74, %76 : vector<8x128xf32>
    %cst_31 = arith.constant 0.000000e+00 : f32
    %78 = vector.broadcast %cst_31 : f32 to vector<8x128xf32>
    %79 = arith.maximumf %77, %78 : vector<8x128xf32>
    %80 = arith.truncf %79 : vector<8x128xf32> to vector<8x128xbf16>
    %c3_32 = arith.constant 3 : index
    %c0_33 = arith.constant 0 : index
    %c0_34 = arith.constant 0 : index
    %81 = vector.load %arg1[%c3_32, %c0_33, %c0_34] : memref<5x128x128xbf16, #tpu.memory_space<vmem>>, vector<1x128x128xbf16>
    %82 = vector.shape_cast %81 : vector<1x128x128xbf16> to vector<128x128xbf16>
    %cst_35 = arith.constant dense<0.000000e+00> : vector<8x128xf32>
    %83 = tpu.matmul %80, %82, %cst_35 {dimension_numbers = #tpu.dot_dimension_numbers<[1], [0], [0], [1], [0, 0, 1, 1], [], []>} : vector<8x128xbf16>, vector<128x128xbf16>, vector<8x128xf32> -> vector<8x128xf32>
    %cst_36 = arith.constant dense<0.000000e+00> : vector<128xf32>
    %84 = vector.multi_reduction <add>, %83, %cst_36 [0] : vector<8x128xf32> to vector<128xf32>
    %85 = vector.shape_cast %84 : vector<128xf32> to vector<1x128xf32>
    %cst_37 = arith.constant 8.000000e+00 : f32
    %86 = vector.broadcast %cst_37 : f32 to vector<1x128xf32>
    %87 = arith.divf %85, %86 : vector<1x128xf32>
    %88 = arith.mulf %83, %83 : vector<8x128xf32>
    %cst_38 = arith.constant dense<0.000000e+00> : vector<128xf32>
    %89 = vector.multi_reduction <add>, %88, %cst_38 [0] : vector<8x128xf32> to vector<128xf32>
    %90 = vector.shape_cast %89 : vector<128xf32> to vector<1x128xf32>
    %cst_39 = arith.constant 8.000000e+00 : f32
    %91 = vector.broadcast %cst_39 : f32 to vector<1x128xf32>
    %92 = arith.divf %90, %91 : vector<1x128xf32>
    %93 = arith.mulf %87, %87 : vector<1x128xf32>
    %94 = arith.subf %92, %93 : vector<1x128xf32>
    %95 = vector.broadcast %87 : vector<1x128xf32> to vector<8x128xf32>
    %96 = arith.subf %83, %95 : vector<8x128xf32>
    %cst_40 = arith.constant 9.99999974E-6 : f32
    %97 = vector.broadcast %cst_40 : f32 to vector<1x128xf32>
    %98 = arith.addf %94, %97 : vector<1x128xf32>
    %99 = math.rsqrt %98 : vector<1x128xf32>
    %100 = vector.broadcast %99 : vector<1x128xf32> to vector<8x128xf32>
    %101 = arith.mulf %96, %100 : vector<8x128xf32>
    %c5 = arith.constant 5 : index
    %c0_41 = arith.constant 0 : index
    %102 = vector.load %arg2[%c5, %c0_41] : memref<8x128xf32, #tpu.memory_space<vmem>>, vector<1x128xf32>
    %103 = vector.broadcast %102 : vector<1x128xf32> to vector<8x128xf32>
    %104 = arith.mulf %101, %103 : vector<8x128xf32>
    %c6 = arith.constant 6 : index
    %c0_42 = arith.constant 0 : index
    %105 = vector.load %arg2[%c6, %c0_42] : memref<8x128xf32, #tpu.memory_space<vmem>>, vector<1x128xf32>
    %106 = vector.broadcast %105 : vector<1x128xf32> to vector<8x128xf32>
    %107 = arith.addf %104, %106 : vector<8x128xf32>
    %cst_43 = arith.constant 0.000000e+00 : f32
    %108 = vector.broadcast %cst_43 : f32 to vector<8x128xf32>
    %109 = arith.maximumf %107, %108 : vector<8x128xf32>
    %110 = arith.truncf %109 : vector<8x128xf32> to vector<8x128xbf16>
    %c4_44 = arith.constant 4 : index
    %c0_45 = arith.constant 0 : index
    %c0_46 = arith.constant 0 : index
    %111 = vector.load %arg1[%c4_44, %c0_45, %c0_46] : memref<5x128x128xbf16, #tpu.memory_space<vmem>>, vector<1x128x128xbf16>
    %112 = vector.shape_cast %111 : vector<1x128x128xbf16> to vector<128x128xbf16>
    %cst_47 = arith.constant dense<0.000000e+00> : vector<8x128xf32>
    %113 = tpu.matmul %110, %112, %cst_47 {dimension_numbers = #tpu.dot_dimension_numbers<[1], [0], [0], [1], [0, 0, 1, 1], [], []>} : vector<8x128xbf16>, vector<128x128xbf16>, vector<8x128xf32> -> vector<8x128xf32>
    %c7 = arith.constant 7 : index
    %c0_48 = arith.constant 0 : index
    %114 = vector.load %arg2[%c7, %c0_48] : memref<8x128xf32, #tpu.memory_space<vmem>>, vector<1x128xf32>
    %115 = vector.broadcast %114 : vector<1x128xf32> to vector<8x128xf32>
    %116 = arith.addf %113, %115 : vector<8x128xf32>
    %c48_i32 = arith.constant 48 : i32
    %117 = tpu.dynamic_rotate %7 by %c48_i32 dim 1 : vector<8x128xf32>, i32 -> vector<8x128xf32>
    %118 = arith.addf %116, %117 : vector<8x128xf32>
    %c0_49 = arith.constant 0 : index
    %c0_50 = arith.constant 0 : index
    %119 = vector.load %arg3[%c0_49, %c0_50] : memref<8x128xf32, #tpu.memory_space<vmem>>, vector<8x128xf32>
    tpu.vector_store %arg3[%c0_49, %c0_50], %118 {strides = array<i32>} : memref<8x128xf32, #tpu.memory_space<vmem>>, vector<8x128xf32>,
    return
  }
}

</mosaic_0001>

<bundles_post_ra>
// kernel: noisepred_forward.1
= control target key start
LH: loop header
LB: loop body
LE: loop exit
PB: predicated region body
PF: predicated region fallthrough
CT: control target
= control target key end

     0   :  { %8 = vsyncpa [#allocation3], 0  ;;  %s970_s12 = smov [#allocation2]   ;;  %s1089_s0 = inlined_call_operand.vmem [shape: f32[8,128], index: 0, kind: input, shape index: {}]   ;;  %s1090_s1 = inlined_call_operand.hbm [shape: bf16[5,128,128], index: 1, kind: input, shape index: {}]   ;;  %s1091_s2 = inlined_call_operand.vmem [shape: f32[8,128], index: 2, kind: input, shape index: {}]   ;;  %s1092_s3 = inlined_call_operand.vmem [shape: f32[8,128], index: 3, kind: output, shape index: {}]  }
   0x1   :  { %s16_s13 = sshll.u32 %s970_s12, 4  ;;  %s946_s16 = scalar_lea.hbm %s1090_s1, 5120  ;;  %s17_s13 = int_to_ptr.vmem [resolvable:$true] %s16_s13 }
   0x2   :  { %p947_p0 = scmp.ne.s32.totalorder %s1090_s1, %s946_s16  ;;  %p950_p1 = scmp.lt.u32.totalorder %s946_s16, %s1090_s1 }
   0x4   :  { %p952_p2 = pnand %p950_p1, %p947_p0 }
   0x6   :  { %955 = shalt.err (!%p952_p2)
}
   0x7   :  { %s956_s21 = scalar_lea.vmem %s17_s13, 5120  ;;  %p961_p4 = scmp.lt.s32.totalorder %s17_s13, %s17_s13 }
   0x8   :  { %p957_p3 = scmp.ne.s32.totalorder %s17_s13, %s956_s21  ;;  %p962_p5 = scmp.lt.s32.totalorder %s956_s21, %s956_s21 }
   0xa   :  { %p963_p6 = por %p962_p5, %p961_p4 }
   0xc   :  { %p964_p7 = pnand %p963_p6, %p957_p3 }
   0xe   :  { %967 = shalt.err (!%p964_p7)
}
   0xf   :  { %s971_s22 = smov 64   ;;  %s972_s23 = smov 4  }
  0x10   :  { %22 = dma.hbm_to_vmem [thread:$0]  %s1090_s1, 5120, %s17_s13, [#allocation3], %s971_s22, %s971_s22, %s972_s23  }
  0x11   :  { %968 = dma.done.wait [#allocation3], 5120  }
  0x12   :  { %969 = vsyncadd [#allocation3], 4294962176  ;;  %v973_v0 = vmov 0.0   ;;  %vm974_vm0 = vmmov 0   ;;  %v896_v1 = vld [vmem:[#allocation2] sm:$0xff]   ;;  %v897_v2 = vld [vmem:[#allocation2 + $0x8] sm:$0xff]   ;;  %v140_v28 = vlaneseq }
  0x13   :  { %789 = vmatprep.subr.bf16.mxu0 %v973_v0  ;;  %805 = vmatprep.mubr.msk.bf16.mxu0 %vm974_vm0, %v973_v0  ;;  %v898_v3 = vld [vmem:[#allocation2 + $0x10] sm:$0xff]   ;;  %v899_v4 = vld [vmem:[#allocation2 + $0x18] sm:$0xff]   ;;  %v29_v5 = vld [vmem:[%s1089_s0] sm:$0xff]  ;;  %s975_s27 = smov 32   ;;  %s976_s29 = smov 48  }
  0x14   :  { %809 = vmatprep.subr.bf16.mxu1 %v973_v0  ;;  %825 = vmatprep.mubr.msk.bf16.mxu1 %vm974_vm0, %v973_v0  ;;  %v900_v6 = vld [vmem:[#allocation2 + $0x20] sm:$0xff]   ;;  %v901_v7 = vld [vmem:[#allocation2 + $0x28] sm:$0xff]   ;;  %v902_v8 = vld [vmem:[#allocation2 + $0x30] sm:$0xff]   ;;  %v30_v10 = vpack.c.bf16 %v29_v5, %v29_v5  ;;  %v141_v29 = vand.u32 127, %v140_v28 }
  0x15   :  { %790 = vmatpush3.bf16.msra.mxu0 %v896_v1  ;;  %151 = vrot.lane.b32.xlu0 %v29_v5, %s975_s27  ;;  %v903_v9 = vld [vmem:[#allocation2 + $0x38] sm:$0xff]   ;;  %v904_v11 = vld [vmem:[#allocation2 + $0x40] sm:$0xff]   ;;  %v905_v12 = vld [vmem:[#allocation2 + $0x48] sm:$0xff]  }
  0x16   :  { %791 = vmatprep.subr.bf16.mxu0 %v973_v0  ;;  %810 = vmatpush3.bf16.msra.mxu1 %v904_v11  ;;  %v906_v13 = vld [vmem:[#allocation2 + $0x50] sm:$0xff]   ;;  %v907_v14 = vld [vmem:[#allocation2 + $0x58] sm:$0xff]   ;;  %v908_v15 = vld [vmem:[#allocation2 + $0x60] sm:$0xff]   ;;  %vm149_vm1 = vcmp.lt.s32.totalorder %v141_v29, 32 }
  0x17   :  { %811 = vmatprep.subr.bf16.mxu1 %v973_v0  ;;  %v909_v16 = vld [vmem:[#allocation2 + $0x68] sm:$0xff]   ;;  %v910_v17 = vld [vmem:[#allocation2 + $0x70] sm:$0xff]   ;;  %v911_v18 = vld [vmem:[#allocation2 + $0x78] sm:$0xff]  }
  0x18   :  { %v695_v19 = vld [vmem:[%s1091_s2] ss:$0 sm:$0xff]  ;;  %v913_v37 = vld [vmem:[#allocation2 + $0x88] sm:$0xff]   ;;  %v914_v38 = vld [vmem:[#allocation2 + $0x90] sm:$0xff]  }
  0x19   :  { %792 = vmatpush3.bf16.msra.mxu0 %v897_v2  ;;  %v912_v36 = vld [vmem:[#allocation2 + $0x80] sm:$0xff]   ;;  %v915_v39 = vld [vmem:[#allocation2 + $0x98] sm:$0xff]   ;;  %v917_v41 = vld [vmem:[#allocation2 + $0xa8] sm:$0xff]  }
  0x1a   :  { %793 = vmatprep.subr.bf16.mxu0 %v973_v0  ;;  %812 = vmatpush3.bf16.msra.mxu1 %v905_v12  ;;  %v916_v40 = vld [vmem:[#allocation2 + $0xa0] sm:$0xff]   ;;  %v918_v42 = vld [vmem:[#allocation2 + $0xb0] sm:$0xff]   ;;  %v919_v43 = vld [vmem:[#allocation2 + $0xb8] sm:$0xff]  }
  0x1b   :  { %813 = vmatprep.subr.bf16.mxu1 %v973_v0  ;;  %v713_v5 = vld [vmem:[%s1091_s2 + $0x1] ss:$0 sm:$0xff] }
  0x1c   :  { %v920_v12 = vld [vmem:[#allocation2 + $0xc0] sm:$0xff]  }
  0x1d   :  { %794 = vmatpush3.bf16.msra.mxu0 %v898_v3 }
  0x1e   :  { %795 = vmatprep.subr.bf16.mxu0 %v973_v0  ;;  %814 = vmatpush3.bf16.msra.mxu1 %v906_v13  ;;  %v921_v13 = vld [vmem:[#allocation2 + $0xc8] sm:$0xff]  }
  0x1f   :  { %815 = vmatprep.subr.bf16.mxu1 %v973_v0 }
  0x21   :  { %796 = vmatpush3.bf16.msra.mxu0 %v899_v4 }
  0x22   :  { %797 = vmatprep.subr.bf16.mxu0 %v973_v0  ;;  %816 = vmatpush3.bf16.msra.mxu1 %v907_v14  ;;  %v922_v14 = vld [vmem:[#allocation2 + $0xd0] sm:$0xff]  }
  0x23   :  { %817 = vmatprep.subr.bf16.mxu1 %v973_v0 }
  0x25   :  { %798 = vmatpush3.bf16.msra.mxu0 %v900_v6 }
  0x26   :  { %799 = vmatprep.subr.bf16.mxu0 %v973_v0  ;;  %818 = vmatpush3.bf16.msra.mxu1 %v908_v15  ;;  %v923_v15 = vld [vmem:[#allocation2 + $0xd8] sm:$0xff]  }
  0x27   :  { %819 = vmatprep.subr.bf16.mxu1 %v973_v0 }
  0x29   :  { %800 = vmatpush3.bf16.msra.mxu0 %v901_v7  ;;  %v714_v7 = vld [vmem:[%s1091_s2 + $0x2] ss:$0 sm:$0xff] }
  0x2a   :  { %801 = vmatprep.subr.bf16.mxu0 %v973_v0  ;;  %820 = vmatpush3.bf16.msra.mxu1 %v909_v16  ;;  %v924_v16 = vld [vmem:[#allocation2 + $0xe0] sm:$0xff]  }
  0x2b   :  { %821 = vmatprep.subr.bf16.mxu1 %v973_v0 }
  0x2d   :  { %802 = vmatpush3.bf16.msra.mxu0 %v902_v8 }
  0x2e   :  { %803 = vmatprep.subr.bf16.mxu0 %v973_v0  ;;  %822 = vmatpush3.bf16.msra.mxu1 %v910_v17  ;;  %v925_v17 = vld [vmem:[#allocation2 + $0xe8] sm:$0xff]  }
  0x2f   :  { %823 = vmatprep.subr.bf16.mxu1 %v973_v0 }
  0x31   :  { %804 = vmatpush3.bf16.msra.mxu0 %v903_v9 }
  0x32   :  { %829 = vmatprep.subr.bf16.mxu0 %v973_v0  ;;  %824 = vmatpush3.bf16.msra.mxu1 %v911_v18  ;;  %v926_v18 = vld [vmem:[#allocation2 + $0xf0] sm:$0xff]  }
  0x33   :  { %849 = vmatprep.subr.bf16.mxu1 %v973_v0 }
  0x34   :  { %806 = vmatmul.mubr.bf16.vlgmr.msra.gmra.mrb[0].mxu0 %v30_v10 }
  0x35   :  { %845 = vmatprep.mubr.msk.bf16.mxu0 %vm974_vm0, %v973_v0  ;;  %830 = vmatpush3.bf16.msra.mxu0 %v912_v36 }
  0x36   :  { %831 = vmatprep.subr.bf16.mxu0 %v973_v0 }
  0x39   :  { %832 = vmatpush3.bf16.msra.mxu0 %v913_v37 }
  0x3a   :  { %833 = vmatprep.subr.bf16.mxu0 %v973_v0 }
  0x3d   :  { %834 = vmatpush3.bf16.msra.mxu0 %v914_v38 }
  0x3e   :  { %835 = vmatprep.subr.bf16.mxu0 %v973_v0 }
  0x41   :  { %836 = vmatpush3.bf16.msra.mxu0 %v915_v39 }
  0x42   :  { %837 = vmatprep.subr.bf16.mxu0 %v973_v0 }
  0x45   :  { %838 = vmatpush3.bf16.msra.mxu0 %v916_v40 }
  0x46   :  { %839 = vmatprep.subr.bf16.mxu0 %v973_v0 }
  0x49   :  { %840 = vmatpush3.bf16.msra.mxu0 %v917_v41 }
  0x4a   :  { %841 = vmatprep.subr.bf16.mxu0 %v973_v0 }
  0x4d   :  { %842 = vmatpush3.bf16.msra.mxu0 %v918_v42 }
  0x4e   :  { %843 = vmatprep.subr.bf16.mxu0 %v973_v0 }
  0x51   :  { %844 = vmatpush3.bf16.msra.mxu0 %v919_v43 }
  0x52   :  { %869 = vmatprep.subr.bf16.mxu0 %v973_v0 }
  0x87   :  { %v152_v31 = vpop.permute.xlu0 %151 }
 0x107   :  { %v134_v20 = vpop.f32.mrb[0].mxu0 }
 0x108   :  { %v135_v21 = vadd.f32 %v695_v19, %v134_v20  ;;  %v807_v22 = vpop.f32.mrb[1].mxu0  ;;  %v927_v19 = vld [vmem:[#allocation2 + $0xf8] sm:$0xff]  }
 0x109   :  { %v137_v23 = vpop.f32.mrb[2].mxu0 }
 0x10a   :  { %v704_v24 = vmul.f32 -1.442695, %v135_v21  ;;  %686 = vrot.lane.b32.xlu0 %v135_v21, %s976_s29  ;;  %v808_v25 = vpop.f32.mrb[3].mxu0 }
 0x10c   :  { %936 = vpow2.f32 %v704_v24 }
 0x116   :  { %v937_v26 = vpop.eup %936 }
 0x117   :  { %v145_v27 = vadd.f32 1.0, %v937_v26 }
 0x119   :  { %938 = vrcp.f32 %v145_v27 }
 0x123   :  { %v939_v30 = vpop.eup %938 }
 0x124   :  { %v148_v32 = vmul.f32 %v939_v30, %v135_v21 }
 0x126   :  { %v150_v33 = vsel %vm149_vm1, %v148_v32, %v135_v21 }
 0x127   :  { %v153_v34 = vadd.f32 %v152_v31, %v150_v33 }
 0x129   :  { %v154_v35 = vpack.c.bf16 %v153_v34, %v153_v34 }
 0x12b   :  { %826 = vmatmul.mubr.bf16.vlgmr.msra.gmra.mrb[0].mxu1 %v154_v35 }
 0x12c   :  { %865 = vmatprep.mubr.msk.bf16.mxu1 %vm974_vm0, %v973_v0  ;;  %850 = vmatpush3.bf16.msra.mxu1 %v920_v12 }
 0x12d   :  { %851 = vmatprep.subr.bf16.mxu1 %v973_v0 }
 0x130   :  { %852 = vmatpush3.bf16.msra.mxu1 %v921_v13 }
 0x131   :  { %853 = vmatprep.subr.bf16.mxu1 %v973_v0 }
 0x134   :  { %854 = vmatpush3.bf16.msra.mxu1 %v922_v14 }
 0x135   :  { %855 = vmatprep.subr.bf16.mxu1 %v973_v0 }
 0x138   :  { %856 = vmatpush3.bf16.msra.mxu1 %v923_v15 }
 0x139   :  { %857 = vmatprep.subr.bf16.mxu1 %v973_v0 }
 0x13c   :  { %858 = vmatpush3.bf16.msra.mxu1 %v924_v16 }
 0x13d   :  { %859 = vmatprep.subr.bf16.mxu1 %v973_v0 }
 0x140   :  { %860 = vmatpush3.bf16.msra.mxu1 %v925_v17 }
 0x141   :  { %861 = vmatprep.subr.bf16.mxu1 %v973_v0 }
 0x144   :  { %862 = vmatpush3.bf16.msra.mxu1 %v926_v18 }
 0x145   :  { %863 = vmatprep.subr.bf16.mxu1 %v973_v0 }
 0x148   :  { %864 = vmatpush3.bf16.msra.mxu1 %v927_v19  ;;  %v733_v19 = vld [vmem:[%s1091_s2 + $0x5] ss:$0 sm:$0xff] }
 0x1fe   :  { %v254_v44 = vpop.f32.mrb[0].mxu1 }
 0x1ff   :  { %v260_v45 = vrot.slane %v254_v44, 4  ;;  %v268_v46 = vmul.f32 %v254_v44, %v254_v44  ;;  %v827_v47 = vpop.f32.mrb[1].mxu1 }
 0x200   :  { %v257_v48 = vpop.f32.mrb[2].mxu1 }
 0x201   :  { %v261_v49 = vadd.f32 %v260_v45, %v254_v44  ;;  %v269_v50 = vrot.slane %v268_v46, 4  ;;  %v828_v51 = vpop.f32.mrb[3].mxu1 }
 0x202   :  { %v928_v51 = vld [vmem:[#allocation2 + $0x100] sm:$0xff]  }
 0x203   :  { %v262_v52 = vrot.slane %v261_v49, 2  ;;  %v270_v53 = vadd.f32 %v269_v50, %v268_v46  ;;  %v724_v46 = vld [vmem:[%s1091_s2 + $0x4] ss:$0 sm:$0xff] }
 0x205   :  { %v263_v54 = vadd.f32 %v262_v52, %v261_v49  ;;  %v271_v55 = vrot.slane %v270_v53, 2  ;;  %v929_v52 = vld [vmem:[#allocation2 + $0x108] sm:$0xff]  }
 0x207   :  { %v264_v56 = vrot.slane %v263_v54, 1  ;;  %v272_v57 = vadd.f32 %v271_v55, %v270_v53  ;;  %v930_v53 = vld [vmem:[#allocation2 + $0x110] sm:$0xff]   ;;  %v932_v55 = vld [vmem:[#allocation2 + $0x120] sm:$0xff]  }
 0x209   :  { %v265_v58 = vadd.f32 %v264_v56, %v263_v54  ;;  %v273_v59 = vrot.slane %v272_v57, 1  ;;  %v931_v54 = vld [vmem:[#allocation2 + $0x118] sm:$0xff]   ;;  %v933_v56 = vld [vmem:[#allocation2 + $0x128] sm:$0xff]  }
 0x20b   :  { %v267_v60 = vmul.f32 0.125, %v265_v58  ;;  %v274_v61 = vadd.f32 %v273_v59, %v272_v57  ;;  %v934_v57 = vld [vmem:[#allocation2 + $0x130] sm:$0xff]   ;;  %v935_v58 = vld [vmem:[#allocation2 + $0x138] sm:$0xff]  }
 0x20d   :  { %v275_v62 = vmul.f32 0.125, %v274_v61  ;;  %v276_v63 = vmul.f32 %v267_v60, %v267_v60  ;;  %v278_v3 = vsub.f32 %v254_v44, %v267_v60  ;;  %v723_v44 = vld [vmem:[%s1091_s2 + $0x3] ss:$0 sm:$0xff] }
 0x20f   :  { %v277_v1 = vsub.f32 %v275_v62, %v276_v63 }
 0x211   :  { %v279_v2 = vadd.f32 1e-05, %v277_v1 }
 0x213   :  { %940 = vrsqrt.f32 %v279_v2 }
 0x21d   :  { %v941_v4 = vpop.eup %940 }
 0x21e   :  { %v281_v6 = vmul.f32 %v941_v4, %v278_v3 }
 0x220   :  { %v287_v8 = vmul.f32 %v713_v5, %v281_v6 }
 0x222   :  { %v293_v9 = vadd.f32 %v714_v7, %v287_v8 }
 0x224   :  { %v294_v10 = vmax.f32 %v293_v9, 0.0 }
 0x226   :  { %v295_v11 = vpack.c.bf16 %v294_v10, %v294_v10 }
 0x228   :  { %846 = vmatmul.mubr.bf16.vlgmr.msra.gmra.mrb[4].mxu0 %v295_v11 }
 0x229   :  { %885 = vmatprep.mubr.msk.bf16.mxu0 %vm974_vm0, %v973_v0  ;;  %870 = vmatpush3.bf16.msra.mxu0 %v928_v51 }
 0x22a   :  { %871 = vmatprep.subr.bf16.mxu0 %v973_v0 }
 0x22d   :  { %872 = vmatpush3.bf16.msra.mxu0 %v929_v52 }
 0x22e   :  { %873 = vmatprep.subr.bf16.mxu0 %v973_v0 }
 0x231   :  { %874 = vmatpush3.bf16.msra.mxu0 %v930_v53 }
 0x232   :  { %875 = vmatprep.subr.bf16.mxu0 %v973_v0 }
 0x235   :  { %876 = vmatpush3.bf16.msra.mxu0 %v931_v54 }
 0x236   :  { %877 = vmatprep.subr.bf16.mxu0 %v973_v0 }
 0x239   :  { %878 = vmatpush3.bf16.msra.mxu0 %v932_v55 }
 0x23a   :  { %879 = vmatprep.subr.bf16.mxu0 %v973_v0 }
 0x23d   :  { %880 = vmatpush3.bf16.msra.mxu0 %v933_v56 }
 0x23e   :  { %881 = vmatprep.subr.bf16.mxu0 %v973_v0 }
 0x241   :  { %882 = vmatpush3.bf16.msra.mxu0 %v934_v57 }
 0x242   :  { %883 = vmatprep.subr.bf16.mxu0 %v973_v0 }
 0x245   :  { %884 = vmatpush3.bf16.msra.mxu0 %v935_v58 }
 0x2fb   :  { %v395_v20 = vpop.f32.mrb[4].mxu0 }
 0x2fc   :  { %v401_v21 = vrot.slane %v395_v20, 4  ;;  %v408_v22 = vmul.f32 %v395_v20, %v395_v20  ;;  %v847_v23 = vpop.f32.mrb[5].mxu0 }
 0x2fd   :  { %v398_v24 = vpop.f32.mrb[6].mxu0 }
 0x2fe   :  { %v402_v25 = vadd.f32 %v401_v21, %v395_v20  ;;  %v409_v26 = vrot.slane %v408_v22, 4  ;;  %v848_v27 = vpop.f32.mrb[7].mxu0  ;;  %v734_v21 = vld [vmem:[%s1091_s2 + $0x6] ss:$0 sm:$0xff] }
 0x300   :  { %v403_v28 = vrot.slane %v402_v25, 2  ;;  %v410_v29 = vadd.f32 %v409_v26, %v408_v22  ;;  %v735_v26 = vld [vmem:[%s1091_s2 + $0x7] ss:$0 sm:$0xff] }
 0x302   :  { %v404_v30 = vadd.f32 %v403_v28, %v402_v25  ;;  %v411_v31 = vrot.slane %v410_v29, 2 }
 0x304   :  { %v405_v32 = vrot.slane %v404_v30, 1  ;;  %v412_v33 = vadd.f32 %v411_v31, %v410_v29 }
 0x306   :  { %v406_v34 = vadd.f32 %v405_v32, %v404_v30  ;;  %v413_v35 = vrot.slane %v412_v33, 1  ;;  %v687_v30 = vpop.permute.xlu0 %686 }
 0x308   :  { %v407_v36 = vmul.f32 0.125, %v406_v34  ;;  %v414_v37 = vadd.f32 %v413_v35, %v412_v33 }
 0x30a   :  { %v415_v38 = vmul.f32 0.125, %v414_v37  ;;  %v416_v39 = vmul.f32 %v407_v36, %v407_v36  ;;  %v418_v42 = vsub.f32 %v395_v20, %v407_v36 }
 0x30c   :  { %v417_v40 = vsub.f32 %v415_v38, %v416_v39 }
 0x30e   :  { %v419_v41 = vadd.f32 1e-05, %v417_v40 }
 0x310   :  { %942 = vrsqrt.f32 %v419_v41 }
 0x31a   :  { %v943_v43 = vpop.eup %942 }
 0x31b   :  { %v421_v45 = vmul.f32 %v943_v43, %v418_v42 }
 0x31d   :  { %v427_v47 = vmul.f32 %v723_v44, %v421_v45 }
 0x31f   :  { %v433_v48 = vadd.f32 %v724_v46, %v427_v47 }
 0x321   :  { %v434_v49 = vmax.f32 %v433_v48, 0.0 }
 0x323   :  { %v435_v50 = vpack.c.bf16 %v434_v49, %v434_v49 }
 0x325   :  { %866 = vmatmul.mubr.bf16.vlgmr.msra.gmra.mrb[4].mxu1 %v435_v50 }
 0x3f8   :  { %v535_v59 = vpop.f32.mrb[4].mxu1 }
 0x3f9   :  { %v541_v60 = vrot.slane %v535_v59, 4  ;;  %v548_v61 = vmul.f32 %v535_v59, %v535_v59  ;;  %v867_v62 = vpop.f32.mrb[5].mxu1 }
 0x3fa   :  { %v538_v63 = vpop.f32.mrb[6].mxu1 }
 0x3fb   :  { %v542_v1 = vadd.f32 %v541_v60, %v535_v59  ;;  %v549_v2 = vrot.slane %v548_v61, 4  ;;  %v868_v3 = vpop.f32.mrb[7].mxu1 }
 0x3fd   :  { %v543_v4 = vrot.slane %v542_v1, 2  ;;  %v550_v5 = vadd.f32 %v549_v2, %v548_v61 }
 0x3ff   :  { %v544_v6 = vadd.f32 %v543_v4, %v542_v1  ;;  %v551_v7 = vrot.slane %v550_v5, 2 }
 0x401   :  { %v545_v8 = vrot.slane %v544_v6, 1  ;;  %v552_v9 = vadd.f32 %v551_v7, %v550_v5 }
 0x403   :  { %v546_v10 = vadd.f32 %v545_v8, %v544_v6  ;;  %v553_v11 = vrot.slane %v552_v9, 1 }
 0x405   :  { %v547_v12 = vmul.f32 0.125, %v546_v10  ;;  %v554_v13 = vadd.f32 %v553_v11, %v552_v9 }
 0x407   :  { %v555_v0 = vmul.f32 0.125, %v554_v13  ;;  %v556_v14 = vmul.f32 %v547_v12, %v547_v12  ;;  %v558_v17 = vsub.f32 %v535_v59, %v547_v12 }
 0x409   :  { %v557_v15 = vsub.f32 %v555_v0, %v556_v14 }
 0x40b   :  { %v559_v16 = vadd.f32 1e-05, %v557_v15 }
 0x40d   :  { %944 = vrsqrt.f32 %v559_v16 }
 0x417   :  { %v945_v18 = vpop.eup %944 }
 0x418   :  { %v561_v20 = vmul.f32 %v945_v18, %v558_v17 }
 0x41a   :  { %v567_v22 = vmul.f32 %v733_v19, %v561_v20 }
 0x41c   :  { %v573_v23 = vadd.f32 %v734_v21, %v567_v22 }
 0x41e   :  { %v574_v24 = vmax.f32 %v573_v23, 0.0 }
 0x420   :  { %v575_v25 = vpack.c.bf16 %v574_v24, %v574_v24 }
 0x422   :  { %886 = vmatmul.mubr.bf16.vlgmr.msra.gmra.mrb[8].mxu0 %v575_v25 }
 0x4f5   :  { %v680_v27 = vpop.f32.mrb[8].mxu0 }
 0x4f6   :  { %v681_v28 = vadd.f32 %v735_v26, %v680_v27  ;;  %v887_v29 = vpop.f32.mrb[9].mxu0 }
 0x4f7   :  { %v683_v31 = vpop.f32.mrb[10].mxu0 }
 0x4f8   :  { %v688_v32 = vadd.f32 %v687_v30, %v681_v28  ;;  %v888_v33 = vpop.f32.mrb[11].mxu0 }
 0x4fa   :  { %689 = vst [vmem:[%s1092_s3] sm:$0xff] %v688_v32 }
 0x4fb   :  { %694 = vsyncpa [#allocation3], 1 }

</bundles_post_ra>
